<compile_context>
chip_gen: v6e
topology: v6e:2x2x1
jax: 0.10.0
libtpu: 0.0.40
codegen_flags: <defaults>
</compile_context>

<pallas_src>
import functools

import jax
import jax.numpy as jnp
from jax import lax
from jax.experimental import pallas as pl
from jax.experimental.pallas import tpu as pltpu

BN_EPS = 1e-5


def _fused_irb_kernel(*refs, apply_residual):
    """One (tile_m)-row slice of the flattened pixel axis per grid step.

    refs (in order):
      p_ref  : (tm, K*K*cin) bf16  im2col patches (BN1 scale folded into w1)
      xr_ref : (tm, cin)     f32   residual input   [only if apply_residual]
      w1_ref : (K*K*cin, planes) bf16  fused KxK conv weight (BN1 folded)
      b1_ref : (1, planes)   f32   folded BN1 bias
      w2_ref : (planes, oup) bf16  1x1 projection weight (BN2 folded)
      b2_ref : (1, oup)      f32   folded BN2 bias
      o_ref  : (tm, oup)     f32   output slab (reshaped to NHWC in the wrapper)
    """
    if apply_residual:
        p_ref, xr_ref, w1_ref, b1_ref, w2_ref, b2_ref, o_ref = refs
    else:
        p_ref, w1_ref, b1_ref, w2_ref, b2_ref, o_ref = refs

    # Fused KxK conv == one MXU matmul on the pre-built patch matrix.
    h = jnp.dot(p_ref[...], w1_ref[...], preferred_element_type=jnp.float32)
    h = jnp.maximum(h + b1_ref[...], 0.0)              # BN1 bias + ReLU (f32)

    # 1x1 projection conv + BN2 bias.
    y = jnp.dot(h.astype(jnp.bfloat16), w2_ref[...],
                preferred_element_type=jnp.float32)
    y = y + b2_ref[...]

    if apply_residual:
        y = y + xr_ref[...]                             # f32 residual

    o_ref[...] = y.astype(o_ref.dtype)


def _pick_tile_m(M, requested=None):
    """Rows of the flattened N*H*W axis per grid step."""
    if requested is not None:
        tm = requested
    elif M >= 1024:
        tm = 512          # fills the MXU M dim, amortizes per-step overhead
    elif M >= 512:
        tm = 256          # still >=2 parallel steps for v7x's two TensorCores
    else:
        tm = M
    tm = max(8, min(tm, M))
    return ((tm + 7) // 8) * 8      # sublane multiple


def fused_inverted_residual_block(x_nhwc, params, *, kernel_size=3, stride=1,
                                  se_ratio=None, survival_prob=None,
                                  tile_m=None):
    """x_nhwc: (N, H, W, inp) float32. Returns (N, H, W, oup)."""
    assert stride == 1, (
        "TODO(synk): stride!=1 path not implemented in the Pallas kernel")
    assert se_ratio is None or se_ratio <= 0, (
        "TODO(synk): SEBlock (se_ratio>0) path not implemented")
    assert not any(k.lower().startswith("se") for k in params), (
        "params contain SE weights but the SE path is not implemented")
    # DropPath with survival_prob is identity at inference; training-mode
    # stochastic depth is not implemented.
    del survival_prob

    N, H, W, cin = x_nhwc.shape
    K = kernel_size
    pad = K // 2
    KKC = K * K * cin

    w1 = params["w1"]                      # (K, K, cin, planes), HWIO
    planes = w1.shape[-1]
    w2 = params["w2"]                      # (planes, oup)
    oup = w2.shape[-1]
    apply_residual = (stride == 1) and (cin == oup)

    # ---- fold BatchNorm (inference) into weights + biases ------------------
    g1, be1, m1, v1 = params["bn1"]
    g2, be2, m2, v2 = params["bn2"]
    s1 = (g1 / jnp.sqrt(v1 + BN_EPS)).astype(jnp.float32)
    b1 = (be1 - m1 * s1).reshape(1, planes).astype(jnp.float32)
    s2 = (g2 / jnp.sqrt(v2 + BN_EPS)).astype(jnp.float32)
    b2 = (be2 - m2 * s2).reshape(1, oup).astype(jnp.float32)
    w1f = (w1 * s1).reshape(KKC, planes).astype(jnp.bfloat16)   # im2col layout
    w2f = (w2 * s2).astype(jnp.bfloat16)

    # ---- im2col in the wrapper (bf16 at the source), lane-contiguous -------
    # Column order (kh, kw, cin) matches w1.reshape(K*K*cin, planes).
    x_bf = x_nhwc.astype(jnp.bfloat16)
    x_pad = jnp.pad(x_bf, ((0, 0), (pad, pad), (pad, pad), (0, 0)))
    taps = [x_pad[:, kh:kh + H, kw:kw + W, :]
            for kh in range(K) for kw in range(K)]
    patches = jnp.concatenate(taps, axis=-1).reshape(N * H * W, KKC)

    M = N * H * W
    tm = _pick_tile_m(M, tile_m)
    Mp = pl.cdiv(M, tm) * tm
    if Mp != M:
        patches = jnp.pad(patches, ((0, Mp - M), (0, 0)))

    inputs = [patches]
    in_specs = [pl.BlockSpec((tm, KKC), lambda i: (i, 0))]
    if apply_residual:
        xres = x_nhwc.reshape(M, cin).astype(jnp.float32)
        if Mp != M:
            xres = jnp.pad(xres, ((0, Mp - M), (0, 0)))
        inputs.append(xres)
        in_specs.append(pl.BlockSpec((tm, cin), lambda i: (i, 0)))

    kern = functools.partial(_fused_irb_kernel, apply_residual=apply_residual)

    def call(single_buffer_consts):
        # Weights / biases have constant index maps: single-buffer them to
        # reclaim the duplicate VMEM reservation (matters at real channel
        # widths, free here).
        pm = ({"pipeline_mode": pl.Buffered(1)}
              if single_buffer_consts else {})
        const_specs = [
            pl.BlockSpec((KKC, planes), lambda i: (0, 0), **pm),
            pl.BlockSpec((1, planes), lambda i: (0, 0), **pm),
            pl.BlockSpec((planes, oup), lambda i: (0, 0), **pm),
            pl.BlockSpec((1, oup), lambda i: (0, 0), **pm),
        ]
        return pl.pallas_call(
            kern,
            out_shape=jax.ShapeDtypeStruct((Mp, oup), x_nhwc.dtype),
            grid_spec=pltpu.PrefetchScalarGridSpec(
                num_scalar_prefetch=0,
                grid=(Mp // tm,),
                in_specs=in_specs + const_specs,
                out_specs=pl.BlockSpec((tm, oup), lambda i: (i, 0)),
            ),
            compiler_params=pltpu.CompilerParams(
                dimension_semantics=("parallel",)),
        )(*inputs, w1f, b1, w2f, b2)

    try:
        out_flat = call(True)
    except Exception:
        # Fallback if this jax build does not support pipeline_mode /
        # Buffered(1) in the pallas_call TPU pipeline (identical math).
        out_flat = call(False)

    return out_flat[:M].reshape(N, H, W, oup)


def reference_forward(x_nhwc, params, *, kernel_size=3):
    """Pure-JAX f32 reference, mirrors the PyTorch module in NHWC."""
    pad = kernel_size // 2
    w1 = params["w1"]
    w2 = params["w2"]
    g1, be1, m1, v1 = params["bn1"]
    g2, be2, m2, v2 = params["bn2"]

    h = lax.conv_general_dilated(
        x_nhwc, w1, window_strides=(1, 1),
        padding=[(pad, pad), (pad, pad)],
        dimension_numbers=("NHWC", "HWIO", "NHWC"))
    h = (h - m1) / jnp.sqrt(v1 + BN_EPS) * g1 + be1
    h = jnp.maximum(h, 0.0)
    y = jnp.einsum("nhwc,co->nhwo", h, w2)
    y = (y - m2) / jnp.sqrt(v2 + BN_EPS) * g2 + be2
    if x_nhwc.shape[-1] == y.shape[-1]:
        y = y + x_nhwc
    return y


def make_params(key, inp, oup, t, kernel_size=3):
    planes = int(inp * t)
    ks = jax.random.split(key, 10)
    w1 = 0.1 * jax.random.normal(ks[0], (kernel_size, kernel_size, inp, planes),
                                 jnp.float32)
    w2 = 0.1 * jax.random.normal(ks[1], (planes, oup), jnp.float32)
    bn1 = (jax.random.uniform(ks[2], (planes,), jnp.float32, 0.5, 1.5),   # gamma
           0.1 * jax.random.normal(ks[3], (planes,), jnp.float32),        # beta
           0.1 * jax.random.normal(ks[4], (planes,), jnp.float32),        # mean
           jax.random.uniform(ks[5], (planes,), jnp.float32, 0.5, 1.5))   # var
    bn2 = (jax.random.uniform(ks[6], (oup,), jnp.float32, 0.5, 1.5),
           0.1 * jax.random.normal(ks[7], (oup,), jnp.float32),
           0.1 * jax.random.normal(ks[8], (oup,), jnp.float32),
           jax.random.uniform(ks[9], (oup,), jnp.float32, 0.5, 1.5))
    return {"w1": w1, "w2": w2, "bn1": bn1, "bn2": bn2}


if __name__ == "__main__":
    # FusedInvertedResidualBlock(inp=8, oup=8, t=4, kernel_size=3, stride=1)
    N, H, W = 2, 16, 16
    inp, oup, t = 8, 8, 4

    key = jax.random.PRNGKey(0)
    kx, kp = jax.random.split(key)
    x_nhwc = jax.random.normal(kx, (N, H, W, inp), jnp.float32)
    params = make_params(kp, inp, oup, t)

    out = fused_inverted_residual_block(x_nhwc, params)
    out = jax.block_until_ready(out)

    ref = reference_forward(x_nhwc, params)
    assert out.shape == (N, H, W, oup)
    # Tolerance accounts for bf16 MXU operands (f32 accumulation, f32 epilogue).
    assert jnp.allclose(out, ref, atol=3e-2, rtol=3e-2), \
        f"max abs err {jnp.max(jnp.abs(out - ref))}"

    print("KERNEL_OK")
</pallas_src>

<mosaic_0001>
module attributes {stable_mosaic.version = 11 : i64} {
  func.func @_fused_irb_kernel(%arg0: i32, %arg1: memref<256x72xbf16, #tpu.memory_space<vmem>>, %arg2: memref<256x8xf32, #tpu.memory_space<vmem>>, %arg3: memref<72x32xbf16, #tpu.memory_space<vmem>>, %arg4: memref<1x32xf32, #tpu.memory_space<vmem>>, %arg5: memref<32x8xbf16, #tpu.memory_space<vmem>>, %arg6: memref<1x8xf32, #tpu.memory_space<vmem>>, %arg7: memref<256x8xf32, #tpu.memory_space<vmem>>) attributes {dimension_semantics = [#tpu.dimension_semantics<parallel>], iteration_bounds = array<i64: 2>, scalar_prefetch = 0 : i64, scratch_operands = 0 : i64, tpu.core_type = #tpu.core_type<tc>, window_params = [{transform_indices = @transform_0, window_bounds = array<i64: 256, 72>}, {transform_indices = @transform_1, window_bounds = array<i64: 256, 8>}, {pipeline_mode = #tpu.pipeline_mode<synchronous>, transform_indices = @transform_2, window_bounds = array<i64: 72, 32>}, {pipeline_mode = #tpu.pipeline_mode<synchronous>, transform_indices = @transform_3, window_bounds = array<i64: 1, 32>}, {pipeline_mode = #tpu.pipeline_mode<synchronous>, transform_indices = @transform_4, window_bounds = array<i64: 32, 8>}, {pipeline_mode = #tpu.pipeline_mode<synchronous>, transform_indices = @transform_5, window_bounds = array<i64: 1, 8>}, {transform_indices = @transform_6, window_bounds = array<i64: 256, 8>}]} {
    %c0 = arith.constant 0 : index
    %c0_0 = arith.constant 0 : index
    %0 = vector.load %arg1[%c0, %c0_0] : memref<256x72xbf16, #tpu.memory_space<vmem>>, vector<256x72xbf16>
    %c0_1 = arith.constant 0 : index
    %c0_2 = arith.constant 0 : index
    %1 = vector.load %arg3[%c0_1, %c0_2] : memref<72x32xbf16, #tpu.memory_space<vmem>>, vector<72x32xbf16>
    %cst = arith.constant dense<0.000000e+00> : vector<256x32xf32>
    %2 = tpu.matmul %0, %1, %cst {dimension_numbers = #tpu.dot_dimension_numbers<[1], [0], [0], [1], [0, 0, 1, 1], [], []>} : vector<256x72xbf16>, vector<72x32xbf16>, vector<256x32xf32> -> vector<256x32xf32>
    %c0_3 = arith.constant 0 : index
    %c0_4 = arith.constant 0 : index
    %3 = vector.load %arg4[%c0_3, %c0_4] : memref<1x32xf32, #tpu.memory_space<vmem>>, vector<1x32xf32>
    %4 = vector.broadcast %3 : vector<1x32xf32> to vector<256x32xf32>
    %5 = arith.addf %2, %4 : vector<256x32xf32>
    %cst_5 = arith.constant 0.000000e+00 : f32
    %6 = vector.broadcast %cst_5 : f32 to vector<256x32xf32>
    %7 = arith.maximumf %5, %6 : vector<256x32xf32>
    %8 = arith.truncf %7 : vector<256x32xf32> to vector<256x32xbf16>
    %c0_6 = arith.constant 0 : index
    %c0_7 = arith.constant 0 : index
    %9 = vector.load %arg5[%c0_6, %c0_7] : memref<32x8xbf16, #tpu.memory_space<vmem>>, vector<32x8xbf16>
    %cst_8 = arith.constant dense<0.000000e+00> : vector<256x8xf32>
    %10 = tpu.matmul %8, %9, %cst_8 {dimension_numbers = #tpu.dot_dimension_numbers<[1], [0], [0], [1], [0, 0, 1, 1], [], []>} : vector<256x32xbf16>, vector<32x8xbf16>, vector<256x8xf32> -> vector<256x8xf32>
    %c0_9 = arith.constant 0 : index
    %c0_10 = arith.constant 0 : index
    %11 = vector.load %arg6[%c0_9, %c0_10] : memref<1x8xf32, #tpu.memory_space<vmem>>, vector<1x8xf32>
    %12 = vector.broadcast %11 : vector<1x8xf32> to vector<256x8xf32>
    %13 = arith.addf %10, %12 : vector<256x8xf32>
    %c0_11 = arith.constant 0 : index
    %c0_12 = arith.constant 0 : index
    %14 = vector.load %arg2[%c0_11, %c0_12] : memref<256x8xf32, #tpu.memory_space<vmem>>, vector<256x8xf32>
    %15 = arith.addf %13, %14 : vector<256x8xf32>
    %c0_13 = arith.constant 0 : index
    %c0_14 = arith.constant 0 : index
    %16 = vector.load %arg7[%c0_13, %c0_14] : memref<256x8xf32, #tpu.memory_space<vmem>>, vector<256x8xf32>
    tpu.vector_store %arg7[%c0_13, %c0_14], %15 {strides = array<i32>} : memref<256x8xf32, #tpu.memory_space<vmem>>, vector<256x8xf32>,
    return
  }
  func.func @transform_0(%arg0: i32) -> (i32, i32) {
    %c0_i32 = arith.constant 0 : i32
    %c0_i32_0 = arith.constant 0 : i32
    return %arg0, %c0_i32 : i32, i32
  }
  func.func @transform_1(%arg0: i32) -> (i32, i32) {
    %c0_i32 = arith.constant 0 : i32
    %c0_i32_0 = arith.constant 0 : i32
    return %arg0, %c0_i32 : i32, i32
  }
  func.func @transform_2(%arg0: i32) -> (i32, i32) {
    %c0_i32 = arith.constant 0 : i32
    %c0_i32_0 = arith.constant 0 : i32
    %c0_i32_1 = arith.constant 0 : i32
    return %c0_i32, %c0_i32_0 : i32, i32
  }
  func.func @transform_3(%arg0: i32) -> (i32, i32) {
    %c0_i32 = arith.constant 0 : i32
    %c0_i32_0 = arith.constant 0 : i32
    %c0_i32_1 = arith.constant 0 : i32
    return %c0_i32, %c0_i32_0 : i32, i32
  }
  func.func @transform_4(%arg0: i32) -> (i32, i32) {
    %c0_i32 = arith.constant 0 : i32
    %c0_i32_0 = arith.constant 0 : i32
    %c0_i32_1 = arith.constant 0 : i32
    return %c0_i32, %c0_i32_0 : i32, i32
  }
  func.func @transform_5(%arg0: i32) -> (i32, i32) {
    %c0_i32 = arith.constant 0 : i32
    %c0_i32_0 = arith.constant 0 : i32
    %c0_i32_1 = arith.constant 0 : i32
    return %c0_i32, %c0_i32_0 : i32, i32
  }
  func.func @transform_6(%arg0: i32) -> (i32, i32) {
    %c0_i32 = arith.constant 0 : i32
    %c0_i32_0 = arith.constant 0 : i32
    return %arg0, %c0_i32 : i32, i32
  }
}

module attributes {stable_mosaic.version = 11 : i64} {
  func.func @_fused_irb_kernel(%arg0: i32, %arg1: memref<256x72xbf16, #tpu.memory_space<vmem>>, %arg2: memref<256x8xf32, #tpu.memory_space<vmem>>, %arg3: memref<72x32xbf16, #tpu.memory_space<vmem>>, %arg4: memref<1x32xf32, #tpu.memory_space<vmem>>, %arg5: memref<32x8xbf16, #tpu.memory_space<vmem>>, %arg6: memref<1x8xf32, #tpu.memory_space<vmem>>, %arg7: memref<256x8xf32, #tpu.memory_space<vmem>>) attributes {dimension_semantics = [#tpu.dimension_semantics<parallel>], iteration_bounds = array<i64: 2>, scalar_prefetch = 0 : i64, scratch_operands = 0 : i64, tpu.core_type = #tpu.core_type<tc>, window_params = [{transform_indices = @transform_0, window_bounds = array<i64: 256, 72>}, {transform_indices = @transform_1, window_bounds = array<i64: 256, 8>}, {pipeline_mode = #tpu.pipeline_mode<synchronous>, transform_indices = @transform_2, window_bounds = array<i64: 72, 32>}, {pipeline_mode = #tpu.pipeline_mode<synchronous>, transform_indices = @transform_3, window_bounds = array<i64: 1, 32>}, {pipeline_mode = #tpu.pipeline_mode<synchronous>, transform_indices = @transform_4, window_bounds = array<i64: 32, 8>}, {pipeline_mode = #tpu.pipeline_mode<synchronous>, transform_indices = @transform_5, window_bounds = array<i64: 1, 8>}, {transform_indices = @transform_6, window_bounds = array<i64: 256, 8>}]} {
    %c0 = arith.constant 0 : index
    %c0_0 = arith.constant 0 : index
    %0 = vector.load %arg1[%c0, %c0_0] : memref<256x72xbf16, #tpu.memory_space<vmem>>, vector<256x72xbf16>
    %c0_1 = arith.constant 0 : index
    %c0_2 = arith.constant 0 : index
    %1 = vector.load %arg3[%c0_1, %c0_2] : memref<72x32xbf16, #tpu.memory_space<vmem>>, vector<72x32xbf16>
    %cst = arith.constant dense<0.000000e+00> : vector<256x32xf32>
    %2 = tpu.matmul %0, %1, %cst {dimension_numbers = #tpu.dot_dimension_numbers<[1], [0], [0], [1], [0, 0, 1, 1], [], []>} : vector<256x72xbf16>, vector<72x32xbf16>, vector<256x32xf32> -> vector<256x32xf32>
    %c0_3 = arith.constant 0 : index
    %c0_4 = arith.constant 0 : index
    %3 = vector.load %arg4[%c0_3, %c0_4] : memref<1x32xf32, #tpu.memory_space<vmem>>, vector<1x32xf32>
    %4 = vector.broadcast %3 : vector<1x32xf32> to vector<256x32xf32>
    %5 = arith.addf %2, %4 : vector<256x32xf32>
    %cst_5 = arith.constant 0.000000e+00 : f32
    %6 = vector.broadcast %cst_5 : f32 to vector<256x32xf32>
    %7 = arith.maximumf %5, %6 : vector<256x32xf32>
    %8 = arith.truncf %7 : vector<256x32xf32> to vector<256x32xbf16>
    %c0_6 = arith.constant 0 : index
    %c0_7 = arith.constant 0 : index
    %9 = vector.load %arg5[%c0_6, %c0_7] : memref<32x8xbf16, #tpu.memory_space<vmem>>, vector<32x8xbf16>
    %cst_8 = arith.constant dense<0.000000e+00> : vector<256x8xf32>
    %10 = tpu.matmul %8, %9, %cst_8 {dimension_numbers = #tpu.dot_dimension_numbers<[1], [0], [0], [1], [0, 0, 1, 1], [], []>} : vector<256x32xbf16>, vector<32x8xbf16>, vector<256x8xf32> -> vector<256x8xf32>
    %c0_9 = arith.constant 0 : index
    %c0_10 = arith.constant 0 : index
    %11 = vector.load %arg6[%c0_9, %c0_10] : memref<1x8xf32, #tpu.memory_space<vmem>>, vector<1x8xf32>
    %12 = vector.broadcast %11 : vector<1x8xf32> to vector<256x8xf32>
    %13 = arith.addf %10, %12 : vector<256x8xf32>
    %c0_11 = arith.constant 0 : index
    %c0_12 = arith.constant 0 : index
    %14 = vector.load %arg2[%c0_11, %c0_12] : memref<256x8xf32, #tpu.memory_space<vmem>>, vector<256x8xf32>
    %15 = arith.addf %13, %14 : vector<256x8xf32>
    %c0_13 = arith.constant 0 : index
    %c0_14 = arith.constant 0 : index
    %16 = vector.load %arg7[%c0_13, %c0_14] : memref<256x8xf32, #tpu.memory_space<vmem>>, vector<256x8xf32>
    tpu.vector_store %arg7[%c0_13, %c0_14], %15 {strides = array<i32>} : memref<256x8xf32, #tpu.memory_space<vmem>>, vector<256x8xf32>,
    return
  }
  func.func @transform_0(%arg0: i32) -> (i32, i32) {
    %c0_i32 = arith.constant 0 : i32
    %c0_i32_0 = arith.constant 0 : i32
    return %arg0, %c0_i32 : i32, i32
  }
  func.func @transform_1(%arg0: i32) -> (i32, i32) {
    %c0_i32 = arith.constant 0 : i32
    %c0_i32_0 = arith.constant 0 : i32
    return %arg0, %c0_i32 : i32, i32
  }
  func.func @transform_2(%arg0: i32) -> (i32, i32) {
    %c0_i32 = arith.constant 0 : i32
    %c0_i32_0 = arith.constant 0 : i32
    %c0_i32_1 = arith.constant 0 : i32
    return %c0_i32, %c0_i32_0 : i32, i32
  }
  func.func @transform_3(%arg0: i32) -> (i32, i32) {
    %c0_i32 = arith.constant 0 : i32
    %c0_i32_0 = arith.constant 0 : i32
    %c0_i32_1 = arith.constant 0 : i32
    return %c0_i32, %c0_i32_0 : i32, i32
  }
  func.func @transform_4(%arg0: i32) -> (i32, i32) {
    %c0_i32 = arith.constant 0 : i32
    %c0_i32_0 = arith.constant 0 : i32
    %c0_i32_1 = arith.constant 0 : i32
    return %c0_i32, %c0_i32_0 : i32, i32
  }
  func.func @transform_5(%arg0: i32) -> (i32, i32) {
    %c0_i32 = arith.constant 0 : i32
    %c0_i32_0 = arith.constant 0 : i32
    %c0_i32_1 = arith.constant 0 : i32
    return %c0_i32, %c0_i32_0 : i32, i32
  }
  func.func @transform_6(%arg0: i32) -> (i32, i32) {
    %c0_i32 = arith.constant 0 : i32
    %c0_i32_0 = arith.constant 0 : i32
    return %arg0, %c0_i32 : i32, i32
  }
}

</mosaic_0001>

<bundles_post_ra>
// kernel: tpu_custom_call.1
= control target key start
LH: loop header
LB: loop body
LE: loop exit
PB: predicated region body
PF: predicated region fallthrough
CT: control target
= control target key end

     0   :  { %s1355_s21 = smov 0   ;;  %s1624_s0 = inlined_call_operand.vmem [shape: bf16[512,72], index: 0, kind: input, shape index: {}]   ;;  %s1625_s1 = inlined_call_operand.vmem [shape: f32[512,8], index: 1, kind: input, shape index: {}]   ;;  %s1626_s2 = inlined_call_operand.vmem [shape: bf16[72,32], index: 2, kind: input, shape index: {}]   ;;  %s1627_s3 = inlined_call_operand.vmem [shape: f32[1,32], index: 3, kind: input, shape index: {}]   ;;  %s1628_s4 = inlined_call_operand.vmem [shape: bf16[32,8], index: 4, kind: input, shape index: {}]   ;;  %s1629_s5 = inlined_call_operand.vmem [shape: f32[1,8], index: 5, kind: input, shape index: {}]   ;;  %s1630_s6 = inlined_call_operand.vmem [shape: f32[512,8], index: 6, kind: output, shape index: {}]  }
   0x1 LB: > { %s1093_s22 = sadd.s32 4294967295, %s1318_s21   ;;  %p1097_p0 = scmp.ge.s32.totalorder %s1318_s21, 1  ;;  %s1318_s21 = sphi %s1355_s21, %s16_s21  }
   0x2   : > { %p224_p1 = scmp.lt.s32.totalorder %s1318_s21, 3 }
   0x4   : > { %p225_p2 = pnand %p1097_p0, %p224_p1 }
   0x5   : > { %s1098_s27 = sshll.u32 (!%p225_p2), %s1093_s22, 5 }
   0x6   : > { %228 = sbr.rel (%p225_p2) target bundleno = 498 (0x1f2), region = 44  ;;  %p260_p3 = scmp.lt.s32.totalorder (!%p225_p2), %s1098_s27, 63 }
   0xb   : > { %v1289_v0 = vld [vmem:[%s1626_s2 + $0x20] ss:$0 sps:$4 sm:$0xff]   ;;  %vm482_vm0 = vcmask 1043456   ;;  %v1290_v1 = vld [vmem:[%s1626_s2 + $0x18] sm:$0xff]   ;;  %v1291_v3 = vld [vmem:[%s1626_s2 + $0x10] sm:$0xff]   ;;  %s1632_s27 = smov (!%p260_p3, %s1098_s27), 63 }
   0xc   : > { %1280 = vmatprep.subr.msk.bf16.mxu0 %vm482_vm0, %v1289_v0  ;;  %v484_v2 = vsel %vm482_vm0, %v1289_v0, 0  ;;  %v1292_v4 = vld [vmem:[%s1626_s2 + $0x8] sm:$0xff]   ;;  %s1099_s8 = sshll.u32 %s1632_s27, 2  ;;  %vm433_vm1 = vcmask 588800   ;;  %v1293_v6 = vld [vmem:[%s1626_s2] sm:$0xff]   ;;  %vm718_vm2 = vcmask 261120  }
   0xd   : > { %1203 = vmatpush3.bf16.msra.mxu0 %v484_v2  ;;  %s1381_s11 = scalar_lea.vmem %s1624_s0, %s1099_s8  ;;  %v1310_v22 = vld [vmem:[%s1628_s4 + $0x8] sm:$0xff]   ;;  %v1311_v23 = vld [vmem:[%s1628_s4] sm:$0xff]   ;;  %s1101_s20 = sshll.u32 %s1632_s27, 3  ;;  %vm992_vm3 = vcmask 64512  }
   0xe   : > { %1204 = vmatprep.subr.bf16.mxu0 %v1290_v1  ;;  %v1294_v5 = vld [vmem:[%s1381_s11] sm:$0xff]   ;;  %v1295_v7 = vld [vmem:[%s1381_s11 + $0x8] sm:$0xff]   ;;  %v1296_v8 = vld [vmem:[%s1381_s11 + $0x10] sm:$0xff]   ;;  %1244 = vmatprep.subr.bf16.mxu1 %v1310_v22  ;;  %s1481_s24 = scalar_lea.vmem %s1625_s1, %s1101_s20  ;;  %s1493_s29 = scalar_lea.vmem %s1630_s6, %s1101_s20 }
   0xf   : > { %1212 = vmatprep.mubr.msk.bf16.mxu0 %vm433_vm1, %v1294_v5  ;;  %v1297_v9 = vld [vmem:[%s1381_s11 + $0x18] sm:$0xff]   ;;  %v1298_v10 = vld [vmem:[%s1381_s11 + $0x20] sm:$0xff]   ;;  %v1299_v11 = vld [vmem:[%s1381_s11 + $0x28] sm:$0xff]   ;;  %1245 = vmatpush3.bf16.msra.mxu1 %v1310_v22 }
  0x10   : > { %v1300_v12 = vld [vmem:[%s1381_s11 + $0x30] sm:$0xff]   ;;  %v1301_v13 = vld [vmem:[%s1381_s11 + $0x38] sm:$0xff]   ;;  %v1302_v14 = vld [vmem:[%s1381_s11 + $0x40] sm:$0xff]   ;;  %1246 = vmatprep.subr.bf16.mxu1 %v1311_v23 }
  0x11   : > { %1205 = vmatpush3.bf16.msra.mxu0 %v1290_v1  ;;  %v1303_v15 = vld [vmem:[%s1381_s11 + $0x48] sm:$0xff]   ;;  %v1304_v16 = vld [vmem:[%s1381_s11 + $0x50] sm:$0xff]   ;;  %v1305_v17 = vld [vmem:[%s1381_s11 + $0x58] sm:$0xff]  }
  0x12   : > { %1206 = vmatprep.subr.bf16.mxu0 %v1291_v3  ;;  %v1306_v18 = vld [vmem:[%s1381_s11 + $0x60] sm:$0xff]   ;;  %v1307_v19 = vld [vmem:[%s1381_s11 + $0x68] sm:$0xff]   ;;  %v1308_v20 = vld [vmem:[%s1381_s11 + $0x70] sm:$0xff]  }
  0x13   : > { %v1309_v21 = vld [vmem:[%s1381_s11 + $0x78] sm:$0xff]   ;;  %1247 = vmatpush3.bf16.msra.mxu1 %v1311_v23  ;;  %v1427_v26 = vld [vmem:[%s1627_s3] ss:$0 sm:$0xff] }
  0x15   : > { %1207 = vmatpush3.bf16.msra.mxu0 %v1291_v3 }
  0x16   : > { %1208 = vmatprep.subr.bf16.mxu0 %v1292_v4 }
  0x19   : > { %1209 = vmatpush3.bf16.msra.mxu0 %v1292_v4 }
  0x1a   : > { %1210 = vmatprep.subr.bf16.mxu0 %v1293_v6 }
  0x1d   : > { %1211 = vmatpush3.bf16.msra.mxu0 %v1293_v6 }
  0x20   : > { %1213 = vmatmul.mubr.msk.bf16.vlgmr.msra.gmra.mxu0 %vm433_vm1, %v1295_v7 }
  0x21   : > { %1216 = vmatprep.mubr.msk.bf16.mxu0 %vm433_vm1, %v1296_v8 }
  0x28   : > { %1217 = vmatmul.mubr.msk.bf16.gmra.mxu0 %vm433_vm1, %v1297_v9 }
  0x29   : > { %1220 = vmatprep.mubr.msk.bf16.mxu0 %vm433_vm1, %v1298_v10 }
  0x30   : > { %1221 = vmatmul.mubr.msk.bf16.gmra.mxu0 %vm433_vm1, %v1299_v11 }
  0x31   : > { %1224 = vmatprep.mubr.msk.bf16.mxu0 %vm433_vm1, %v1300_v12 }
  0x38   : > { %1225 = vmatmul.mubr.msk.bf16.gmra.mxu0 %vm433_vm1, %v1301_v13 }
  0x39   : > { %1228 = vmatprep.mubr.msk.bf16.mxu0 %vm433_vm1, %v1302_v14 }
  0x40   : > { %1229 = vmatmul.mubr.msk.bf16.gmra.mxu0 %vm433_vm1, %v1303_v15 }
  0x41   : > { %1232 = vmatprep.mubr.msk.bf16.mxu0 %vm433_vm1, %v1304_v16 }
  0x48   : > { %1233 = vmatmul.mubr.msk.bf16.gmra.mxu0 %vm433_vm1, %v1305_v17 }
  0x49   : > { %1236 = vmatprep.mubr.msk.bf16.mxu0 %vm433_vm1, %v1306_v18 }
  0x50   : > { %1237 = vmatmul.mubr.msk.bf16.gmra.mxu0 %vm433_vm1, %v1307_v19 }
  0x51   : > { %1240 = vmatprep.mubr.msk.bf16.mxu0 %vm433_vm1, %v1308_v20 }
  0x58   : > { %1241 = vmatmul.mubr.msk.bf16.gmra.mxu0 %vm433_vm1, %v1309_v21 }
  0xe0   : > { %v1214_v24 = vpop.f32.mrf.mxu0 }
  0xe1   : > { %v529_v30 = vadd.f32 %v1214_v24, %v1427_v26 }
  0xe2   : > { %v520_v25 = vpop.f32.mrf.mxu0 }
  0xe3   : > { %v521_v28 = vadd.f32 %v1427_v26, %v520_v25  ;;  %v649_v37 = vmax.f32 %v529_v30, 0.0 }
  0xe4   : > { %v1215_v27 = vpop.f32.mrf.mxu0 }
  0xe5   : > { %v532_v29 = vadd.f32 %v1215_v27, %v1427_v26  ;;  %v647_v35 = vmax.f32 %v521_v28, 0.0 }
  0xe6   : > { %v523_v31 = vpop.f32.mrf.mxu0 }
  0xe7   : > { %v524_v32 = vadd.f32 %v1427_v26, %v523_v31  ;;  %v650_v33 = vmax.f32 %v532_v29, 0.0 }
  0xe8   : > { %v1218_v34 = vpop.f32.mrf.mxu0 }
  0xe9   : > { %v648_v36 = vmax.f32 %v524_v32, 0.0  ;;  %v680_v40 = vpack.c.bf16 %v650_v33, %v649_v37  ;;  %v545_v44 = vadd.f32 %v1218_v34, %v1427_v26 }
  0xea   : > { %v536_v38 = vpop.f32.mrf.mxu0 }
  0xeb   : > { %v679_v39 = vpack.c.bf16 %v648_v36, %v647_v35  ;;  %v537_v42 = vadd.f32 %v1427_v26, %v536_v38  ;;  %v653_v51 = vmax.f32 %v545_v44, 0.0 }
  0xec   : > { %v1219_v41 = vpop.f32.mrf.mxu0 }
  0xed   : > { %v548_v43 = vadd.f32 %v1219_v41, %v1427_v26  ;;  %1248 = vmatprep.mubr.msk.bf16.mxu1 %vm718_vm2, %v679_v39  ;;  %v651_v49 = vmax.f32 %v537_v42, 0.0 }
  0xee   : > { %v539_v45 = vpop.f32.mrf.mxu0  ;;  %1249 = vmatmul.mubr.msk.bf16.vlgmr.msra.gmra.mxu1 %vm718_vm2, %v680_v40 }
  0xef   : > { %v540_v46 = vadd.f32 %v1427_v26, %v539_v45  ;;  %v654_v47 = vmax.f32 %v548_v43, 0.0 }
  0xf0   : > { %v1222_v48 = vpop.f32.mrf.mxu0 }
  0xf1   : > { %v652_v50 = vmax.f32 %v540_v46, 0.0  ;;  %v682_v54 = vpack.c.bf16 %v654_v47, %v653_v51  ;;  %v561_v58 = vadd.f32 %v1222_v48, %v1427_v26 }
  0xf2   : > { %v552_v52 = vpop.f32.mrf.mxu0 }
  0xf3   : > { %v681_v53 = vpack.c.bf16 %v652_v50, %v651_v49  ;;  %v553_v56 = vadd.f32 %v1427_v26, %v552_v52  ;;  %v657_v1 = vmax.f32 %v561_v58, 0.0 }
  0xf4   : > { %v1223_v55 = vpop.f32.mrf.mxu0 }
  0xf5   : > { %v564_v57 = vadd.f32 %v1223_v55, %v1427_v26  ;;  %1252 = vmatprep.mubr.msk.bf16.mxu1 %vm718_vm2, %v681_v53  ;;  %v655_v63 = vmax.f32 %v553_v56, 0.0 }
  0xf6   : > { %v555_v59 = vpop.f32.mrf.mxu0  ;;  %1253 = vmatmul.mubr.msk.bf16.gmra.mxu1 %vm718_vm2, %v682_v54 }
  0xf7   : > { %v556_v60 = vadd.f32 %v1427_v26, %v555_v59  ;;  %v658_v61 = vmax.f32 %v564_v57, 0.0 }
  0xf8   : > { %v1226_v62 = vpop.f32.mrf.mxu0 }
  0xf9   : > { %v656_v0 = vmax.f32 %v556_v60, 0.0  ;;  %v684_v4 = vpack.c.bf16 %v658_v61, %v657_v1  ;;  %v577_v8 = vadd.f32 %v1226_v62, %v1427_v26 }
  0xfa   : > { %v568_v2 = vpop.f32.mrf.mxu0 }
  0xfb   : > { %v683_v3 = vpack.c.bf16 %v656_v0, %v655_v63  ;;  %v569_v6 = vadd.f32 %v1427_v26, %v568_v2  ;;  %v661_v15 = vmax.f32 %v577_v8, 0.0 }
  0xfc   : > { %v1227_v5 = vpop.f32.mrf.mxu0 }
  0xfd   : > { %v580_v7 = vadd.f32 %v1227_v5, %v1427_v26  ;;  %1256 = vmatprep.mubr.msk.bf16.mxu1 %vm718_vm2, %v683_v3  ;;  %v659_v13 = vmax.f32 %v569_v6, 0.0 }
  0xfe   : > { %v571_v9 = vpop.f32.mrf.mxu0  ;;  %1257 = vmatmul.mubr.msk.bf16.gmra.mxu1 %vm718_vm2, %v684_v4 }
  0xff   : > { %v572_v10 = vadd.f32 %v1427_v26, %v571_v9  ;;  %v662_v11 = vmax.f32 %v580_v7, 0.0 }
 0x100   : > { %v1230_v12 = vpop.f32.mrf.mxu0 }
 0x101   : > { %v660_v14 = vmax.f32 %v572_v10, 0.0  ;;  %v686_v18 = vpack.c.bf16 %v662_v11, %v661_v15  ;;  %v593_v22 = vadd.f32 %v1230_v12, %v1427_v26  ;;  %v930_v11 = vld [vmem:[%s1481_s24 + $0x10] sm:$0xff] }
 0x102   : > { %v584_v16 = vpop.f32.mrf.mxu0 }
 0x103   : > { %v685_v17 = vpack.c.bf16 %v660_v14, %v659_v13  ;;  %v585_v20 = vadd.f32 %v1427_v26, %v584_v16  ;;  %v665_v30 = vmax.f32 %v593_v22, 0.0  ;;  %v928_v14 = vld [vmem:[%s1481_s24] sm:$0xff]  ;;  %v929_v22 = vld [vmem:[%s1481_s24 + $0x8] sm:$0xff] }
 0x104   : > { %v1231_v19 = vpop.f32.mrf.mxu0 }
 0x105   : > { %v596_v21 = vadd.f32 %v1231_v19, %v1427_v26  ;;  %1260 = vmatprep.mubr.msk.bf16.mxu1 %vm718_vm2, %v685_v17  ;;  %v663_v28 = vmax.f32 %v585_v20, 0.0 }
 0x106   : > { %v587_v23 = vpop.f32.mrf.mxu0  ;;  %1261 = vmatmul.mubr.msk.bf16.gmra.mxu1 %vm718_vm2, %v686_v18  ;;  %v931_v18 = vld [vmem:[%s1481_s24 + $0x18] sm:$0xff] }
 0x107   : > { %v588_v24 = vadd.f32 %v1427_v26, %v587_v23  ;;  %v666_v25 = vmax.f32 %v596_v21, 0.0 }
 0x108   : > { %v1234_v27 = vpop.f32.mrf.mxu0 }
 0x109   : > { %v664_v29 = vmax.f32 %v588_v24, 0.0  ;;  %v688_v33 = vpack.c.bf16 %v666_v25, %v665_v30  ;;  %v609_v37 = vadd.f32 %v1234_v27, %v1427_v26  ;;  %v934_v27 = vld [vmem:[%s1481_s24 + $0x30] sm:$0xff] }
 0x10a   : > { %v600_v31 = vpop.f32.mrf.mxu0 }
 0x10b   : > { %v687_v32 = vpack.c.bf16 %v664_v29, %v663_v28  ;;  %v601_v35 = vadd.f32 %v1427_v26, %v600_v31  ;;  %v669_v44 = vmax.f32 %v609_v37, 0.0  ;;  %v932_v31 = vld [vmem:[%s1481_s24 + $0x20] sm:$0xff] }
 0x10c   : > { %v1235_v34 = vpop.f32.mrf.mxu0 }
 0x10d   : > { %v612_v36 = vadd.f32 %v1235_v34, %v1427_v26  ;;  %1264 = vmatprep.mubr.msk.bf16.mxu1 %vm718_vm2, %v687_v32  ;;  %v667_v42 = vmax.f32 %v601_v35, 0.0  ;;  %v935_v35 = vld [vmem:[%s1481_s24 + $0x38] sm:$0xff] }
 0x10e   : > { %v603_v38 = vpop.f32.mrf.mxu0  ;;  %1265 = vmatmul.mubr.msk.bf16.gmra.mxu1 %vm718_vm2, %v688_v33 }
 0x10f   : > { %v604_v39 = vadd.f32 %v1427_v26, %v603_v38  ;;  %v670_v40 = vmax.f32 %v612_v36, 0.0 }
 0x110   : > { %v1238_v41 = vpop.f32.mrf.mxu0 }
 0x111   : > { %v668_v43 = vmax.f32 %v604_v39, 0.0  ;;  %v690_v47 = vpack.c.bf16 %v670_v40, %v669_v44  ;;  %v625_v51 = vadd.f32 %v1238_v41, %v1427_v26  ;;  %v933_v39 = vld [vmem:[%s1481_s24 + $0x28] sm:$0xff] }
 0x112   : > { %v616_v45 = vpop.f32.mrf.mxu0 }
 0x113   : > { %v689_v46 = vpack.c.bf16 %v668_v43, %v667_v42  ;;  %v617_v49 = vadd.f32 %v1427_v26, %v616_v45  ;;  %v673_v58 = vmax.f32 %v625_v51, 0.0  ;;  %v938_v43 = vld [vmem:[%s1481_s24 + $0x50] sm:$0xff]  ;;  %v939_v51 = vld [vmem:[%s1481_s24 + $0x58] sm:$0xff] }
 0x114   : > { %v1239_v48 = vpop.f32.mrf.mxu0 }
 0x115   : > { %v628_v50 = vadd.f32 %v1239_v48, %v1427_v26  ;;  %1268 = vmatprep.mubr.msk.bf16.mxu1 %vm718_vm2, %v689_v46  ;;  %v671_v56 = vmax.f32 %v617_v49, 0.0 }
 0x116   : > { %v619_v52 = vpop.f32.mrf.mxu0  ;;  %1269 = vmatmul.mubr.msk.bf16.gmra.mxu1 %vm718_vm2, %v690_v47  ;;  %v936_v47 = vld [vmem:[%s1481_s24 + $0x40] sm:$0xff] }
 0x117   : > { %v620_v53 = vadd.f32 %v1427_v26, %v619_v52  ;;  %v674_v54 = vmax.f32 %v628_v50, 0.0 }
 0x118   : > { %v1242_v55 = vpop.f32.mrf.mxu0 }
 0x119   : > { %v672_v57 = vmax.f32 %v620_v53, 0.0  ;;  %v692_v61 = vpack.c.bf16 %v674_v54, %v673_v58  ;;  %v641_v1 = vadd.f32 %v1242_v55, %v1427_v26  ;;  %v937_v55 = vld [vmem:[%s1481_s24 + $0x48] sm:$0xff] }
 0x11a   : > { %v632_v59 = vpop.f32.mrf.mxu0 }
 0x11b   : > { %v691_v60 = vpack.c.bf16 %v672_v57, %v671_v56  ;;  %v633_v63 = vadd.f32 %v1427_v26, %v632_v59  ;;  %v677_v7 = vmax.f32 %v641_v1, 0.0  ;;  %v942_v59 = vld [vmem:[%s1481_s24 + $0x70] sm:$0xff] }
 0x11c   : > { %v1243_v62 = vpop.f32.mrf.mxu0 }
 0x11d   : > { %v644_v0 = vadd.f32 %v1243_v62, %v1427_v26  ;;  %1272 = vmatprep.mubr.msk.bf16.mxu1 %vm718_vm2, %v691_v60  ;;  %v675_v5 = vmax.f32 %v633_v63, 0.0  ;;  %v940_v63 = vld [vmem:[%s1481_s24 + $0x60] sm:$0xff] }
 0x11e   : > { %v635_v2 = vpop.f32.mrf.mxu0  ;;  %1273 = vmatmul.mubr.msk.bf16.gmra.mxu1 %vm718_vm2, %v692_v61 }
 0x11f   : > { %v636_v3 = vadd.f32 %v1427_v26, %v635_v2  ;;  %v678_v4 = vmax.f32 %v644_v0, 0.0  ;;  %v1486_v26 = vld [vmem:[%s1629_s5] ss:$0 sm:$0xff] }
 0x121   : > { %v676_v6 = vmax.f32 %v636_v3, 0.0  ;;  %v694_v9 = vpack.c.bf16 %v678_v4, %v677_v7  ;;  %v943_v3 = vld [vmem:[%s1481_s24 + $0x78] sm:$0xff]  ;;  %v941_v7 = vld [vmem:[%s1481_s24 + $0x68] sm:$0xff] }
 0x123   : > { %v693_v8 = vpack.c.bf16 %v676_v6, %v675_v5 }
 0x125   : > { %1276 = vmatprep.mubr.msk.bf16.mxu1 %vm718_vm2, %v693_v8 }
 0x126   : > { %1277 = vmatmul.mubr.msk.bf16.gmra.mxu1 %vm718_vm2, %v694_v9 }
 0x1ae   : > { %v1250_v10 = vpop.f32.mrf.mxu1 }
 0x1af   : > { %v810_v12 = vadd.f32 %v1250_v10, %v1486_v26 }
 0x1b0   : > { %v801_v13 = vpop.f32.mrf.mxu1 }
 0x1b1   : > { %v962_v15 = vadd.f32 %v930_v11, %v810_v12  ;;  %v802_v16 = vadd.f32 %v1486_v26, %v801_v13  ;;  %v946_v11 = vld [vmem:[%s1481_s24 + $0x90] sm:$0xff] }
 0x1b2   : > { %v1251_v17 = vpop.f32.mrf.mxu1 }
 0x1b3   : > { %995 = vst.msk [vmem:[%s1493_s29 + $0x10] sm:$0xff] %vm992_vm3, %v962_v15  ;;  %v960_v19 = vadd.f32 %v928_v14, %v802_v16  ;;  %v813_v20 = vadd.f32 %v1251_v17, %v1486_v26  ;;  %v944_v15 = vld [vmem:[%s1481_s24 + $0x80] sm:$0xff] }
 0x1b4   : > { %v804_v21 = vpop.f32.mrf.mxu1 }
 0x1b5   : > { %993 = vst.msk [vmem:[%s1493_s29] sm:$0xff] %vm992_vm3, %v960_v19  ;;  %v963_v23 = vadd.f32 %v931_v18, %v813_v20  ;;  %v805_v24 = vadd.f32 %v1486_v26, %v804_v21  ;;  %v947_v19 = vld [vmem:[%s1481_s24 + $0x98] sm:$0xff] }
 0x1b6   : > { %v1254_v25 = vpop.f32.mrf.mxu1 }
 0x1b7   : > { %996 = vst.msk [vmem:[%s1493_s29 + $0x18] sm:$0xff] %vm992_vm3, %v963_v23  ;;  %v961_v28 = vadd.f32 %v929_v22, %v805_v24  ;;  %v826_v29 = vadd.f32 %v1254_v25, %v1486_v26  ;;  %v945_v23 = vld [vmem:[%s1481_s24 + $0x88] sm:$0xff] }
 0x1b8   : > { %v817_v30 = vpop.f32.mrf.mxu1 }
 0x1b9   : > { %994 = vst.msk [vmem:[%s1493_s29 + $0x8] sm:$0xff] %vm992_vm3, %v961_v28  ;;  %v966_v32 = vadd.f32 %v934_v27, %v826_v29  ;;  %v818_v33 = vadd.f32 %v1486_v26, %v817_v30  ;;  %v950_v28 = vld [vmem:[%s1481_s24 + $0xb0] sm:$0xff] }
 0x1ba   : > { %v1255_v34 = vpop.f32.mrf.mxu1 }
 0x1bb   : > { %999 = vst.msk [vmem:[%s1493_s29 + $0x30] sm:$0xff] %vm992_vm3, %v966_v32  ;;  %v964_v36 = vadd.f32 %v932_v31, %v818_v33  ;;  %v829_v37 = vadd.f32 %v1255_v34, %v1486_v26  ;;  %v948_v32 = vld [vmem:[%s1481_s24 + $0xa0] sm:$0xff] }
 0x1bc   : > { %v820_v38 = vpop.f32.mrf.mxu1 }
 0x1bd   : > { %997 = vst.msk [vmem:[%s1493_s29 + $0x20] sm:$0xff] %vm992_vm3, %v964_v36  ;;  %v967_v40 = vadd.f32 %v935_v35, %v829_v37  ;;  %v821_v41 = vadd.f32 %v1486_v26, %v820_v38  ;;  %v951_v36 = vld [vmem:[%s1481_s24 + $0xb8] sm:$0xff] }
 0x1be   : > { %v1258_v42 = vpop.f32.mrf.mxu1 }
 0x1bf   : > { %1000 = vst.msk [vmem:[%s1493_s29 + $0x38] sm:$0xff] %vm992_vm3, %v967_v40  ;;  %v965_v44 = vadd.f32 %v933_v39, %v821_v41  ;;  %v842_v45 = vadd.f32 %v1258_v42, %v1486_v26  ;;  %v949_v40 = vld [vmem:[%s1481_s24 + $0xa8] sm:$0xff] }
 0x1c0   : > { %v833_v46 = vpop.f32.mrf.mxu1 }
 0x1c1   : > { %998 = vst.msk [vmem:[%s1493_s29 + $0x28] sm:$0xff] %vm992_vm3, %v965_v44  ;;  %v970_v48 = vadd.f32 %v938_v43, %v842_v45  ;;  %v834_v49 = vadd.f32 %v1486_v26, %v833_v46  ;;  %v954_v44 = vld [vmem:[%s1481_s24 + $0xd0] sm:$0xff] }
 0x1c2   : > { %v1259_v50 = vpop.f32.mrf.mxu1 }
 0x1c3   : > { %1003 = vst.msk [vmem:[%s1493_s29 + $0x50] sm:$0xff] %vm992_vm3, %v970_v48  ;;  %v968_v52 = vadd.f32 %v936_v47, %v834_v49  ;;  %v845_v53 = vadd.f32 %v1259_v50, %v1486_v26  ;;  %v952_v48 = vld [vmem:[%s1481_s24 + $0xc0] sm:$0xff] }
 0x1c4   : > { %v836_v54 = vpop.f32.mrf.mxu1 }
 0x1c5   : > { %1001 = vst.msk [vmem:[%s1493_s29 + $0x40] sm:$0xff] %vm992_vm3, %v968_v52  ;;  %v971_v56 = vadd.f32 %v939_v51, %v845_v53  ;;  %v837_v57 = vadd.f32 %v1486_v26, %v836_v54  ;;  %v955_v52 = vld [vmem:[%s1481_s24 + $0xd8] sm:$0xff] }
 0x1c6   : > { %v1262_v58 = vpop.f32.mrf.mxu1 }
 0x1c7   : > { %1004 = vst.msk [vmem:[%s1493_s29 + $0x58] sm:$0xff] %vm992_vm3, %v971_v56  ;;  %v969_v60 = vadd.f32 %v937_v55, %v837_v57  ;;  %v858_v61 = vadd.f32 %v1262_v58, %v1486_v26  ;;  %v953_v56 = vld [vmem:[%s1481_s24 + $0xc8] sm:$0xff] }
 0x1c8   : > { %v849_v62 = vpop.f32.mrf.mxu1 }
 0x1c9   : > { %1002 = vst.msk [vmem:[%s1493_s29 + $0x48] sm:$0xff] %vm992_vm3, %v969_v60  ;;  %v974_v0 = vadd.f32 %v942_v59, %v858_v61  ;;  %v850_v1 = vadd.f32 %v1486_v26, %v849_v62  ;;  %v958_v60 = vld [vmem:[%s1481_s24 + $0xf0] sm:$0xff] }
 0x1ca   : > { %v1263_v2 = vpop.f32.mrf.mxu1 }
 0x1cb   : > { %1007 = vst.msk [vmem:[%s1493_s29 + $0x70] sm:$0xff] %vm992_vm3, %v974_v0  ;;  %v972_v4 = vadd.f32 %v940_v63, %v850_v1  ;;  %v861_v5 = vadd.f32 %v1263_v2, %v1486_v26  ;;  %v956_v0 = vld [vmem:[%s1481_s24 + $0xe0] sm:$0xff] }
 0x1cc   : > { %v852_v6 = vpop.f32.mrf.mxu1 }
 0x1cd   : > { %1005 = vst.msk [vmem:[%s1493_s29 + $0x60] sm:$0xff] %vm992_vm3, %v972_v4  ;;  %v975_v8 = vadd.f32 %v943_v3, %v861_v5  ;;  %v853_v9 = vadd.f32 %v1486_v26, %v852_v6  ;;  %v959_v4 = vld [vmem:[%s1481_s24 + $0xf8] sm:$0xff] }
 0x1ce   : > { %v1266_v10 = vpop.f32.mrf.mxu1 }
 0x1cf   : > { %1008 = vst.msk [vmem:[%s1493_s29 + $0x78] sm:$0xff] %vm992_vm3, %v975_v8  ;;  %v973_v12 = vadd.f32 %v941_v7, %v853_v9  ;;  %v874_v13 = vadd.f32 %v1266_v10, %v1486_v26  ;;  %v957_v8 = vld [vmem:[%s1481_s24 + $0xe8] sm:$0xff] }
 0x1d0   : > { %v865_v14 = vpop.f32.mrf.mxu1 }
 0x1d1   : > { %1006 = vst.msk [vmem:[%s1493_s29 + $0x68] sm:$0xff] %vm992_vm3, %v973_v12  ;;  %v978_v16 = vadd.f32 %v946_v11, %v874_v13  ;;  %v866_v17 = vadd.f32 %v1486_v26, %v865_v14 }
 0x1d2   : > { %v1267_v18 = vpop.f32.mrf.mxu1 }
 0x1d3   : > { %1011 = vst.msk [vmem:[%s1493_s29 + $0x90] sm:$0xff] %vm992_vm3, %v978_v16  ;;  %v976_v20 = vadd.f32 %v944_v15, %v866_v17  ;;  %v877_v21 = vadd.f32 %v1267_v18, %v1486_v26 }
 0x1d4   : > { %v868_v22 = vpop.f32.mrf.mxu1 }
 0x1d5   : > { %1009 = vst.msk [vmem:[%s1493_s29 + $0x80] sm:$0xff] %vm992_vm3, %v976_v20  ;;  %v979_v24 = vadd.f32 %v947_v19, %v877_v21  ;;  %v869_v25 = vadd.f32 %v1486_v26, %v868_v22 }
 0x1d6   : > { %v1270_v27 = vpop.f32.mrf.mxu1 }
 0x1d7   : > { %1012 = vst.msk [vmem:[%s1493_s29 + $0x98] sm:$0xff] %vm992_vm3, %v979_v24  ;;  %v977_v29 = vadd.f32 %v945_v23, %v869_v25  ;;  %v890_v30 = vadd.f32 %v1270_v27, %v1486_v26 }
 0x1d8   : > { %v881_v31 = vpop.f32.mrf.mxu1 }
 0x1d9   : > { %1010 = vst.msk [vmem:[%s1493_s29 + $0x88] sm:$0xff] %vm992_vm3, %v977_v29  ;;  %v982_v33 = vadd.f32 %v950_v28, %v890_v30  ;;  %v882_v34 = vadd.f32 %v1486_v26, %v881_v31 }
 0x1da   : > { %v1271_v35 = vpop.f32.mrf.mxu1 }
 0x1db   : > { %1015 = vst.msk [vmem:[%s1493_s29 + $0xb0] sm:$0xff] %vm992_vm3, %v982_v33  ;;  %v980_v37 = vadd.f32 %v948_v32, %v882_v34  ;;  %v893_v38 = vadd.f32 %v1271_v35, %v1486_v26 }
 0x1dc   : > { %v884_v39 = vpop.f32.mrf.mxu1 }
 0x1dd   : > { %1013 = vst.msk [vmem:[%s1493_s29 + $0xa0] sm:$0xff] %vm992_vm3, %v980_v37  ;;  %v983_v41 = vadd.f32 %v951_v36, %v893_v38  ;;  %v885_v42 = vadd.f32 %v1486_v26, %v884_v39 }
 0x1de   : > { %v1274_v43 = vpop.f32.mrf.mxu1 }
 0x1df   : > { %1016 = vst.msk [vmem:[%s1493_s29 + $0xb8] sm:$0xff] %vm992_vm3, %v983_v41  ;;  %v981_v45 = vadd.f32 %v949_v40, %v885_v42  ;;  %v906_v46 = vadd.f32 %v1274_v43, %v1486_v26 }
 0x1e0   : > { %v897_v47 = vpop.f32.mrf.mxu1 }
 0x1e1   : > { %1014 = vst.msk [vmem:[%s1493_s29 + $0xa8] sm:$0xff] %vm992_vm3, %v981_v45  ;;  %v986_v49 = vadd.f32 %v954_v44, %v906_v46  ;;  %v898_v50 = vadd.f32 %v1486_v26, %v897_v47 }
 0x1e2   : > { %v1275_v51 = vpop.f32.mrf.mxu1 }
 0x1e3   : > { %1019 = vst.msk [vmem:[%s1493_s29 + $0xd0] sm:$0xff] %vm992_vm3, %v986_v49  ;;  %v984_v53 = vadd.f32 %v952_v48, %v898_v50  ;;  %v909_v54 = vadd.f32 %v1275_v51, %v1486_v26 }
 0x1e4   : > { %v900_v55 = vpop.f32.mrf.mxu1 }
 0x1e5   : > { %1017 = vst.msk [vmem:[%s1493_s29 + $0xc0] sm:$0xff] %vm992_vm3, %v984_v53  ;;  %v987_v57 = vadd.f32 %v955_v52, %v909_v54  ;;  %v901_v58 = vadd.f32 %v1486_v26, %v900_v55 }
 0x1e6   : > { %v1278_v59 = vpop.f32.mrf.mxu1 }
 0x1e7   : > { %1020 = vst.msk [vmem:[%s1493_s29 + $0xd8] sm:$0xff] %vm992_vm3, %v987_v57  ;;  %v985_v61 = vadd.f32 %v953_v56, %v901_v58  ;;  %v922_v62 = vadd.f32 %v1278_v59, %v1486_v26 }
 0x1e8   : > { %v913_v63 = vpop.f32.mrf.mxu1 }
 0x1e9   : > { %1018 = vst.msk [vmem:[%s1493_s29 + $0xc8] sm:$0xff] %vm992_vm3, %v985_v61  ;;  %v990_v1 = vadd.f32 %v958_v60, %v922_v62  ;;  %v914_v2 = vadd.f32 %v1486_v26, %v913_v63 }
 0x1ea   : > { %v1279_v3 = vpop.f32.mrf.mxu1 }
 0x1eb   : > { %1023 = vst.msk [vmem:[%s1493_s29 + $0xf0] sm:$0xff] %vm992_vm3, %v990_v1  ;;  %v988_v5 = vadd.f32 %v956_v0, %v914_v2  ;;  %v925_v6 = vadd.f32 %v1279_v3, %v1486_v26 }
 0x1ec   : > { %v916_v7 = vpop.f32.mrf.mxu1 }
 0x1ed   : > { %1021 = vst.msk [vmem:[%s1493_s29 + $0xe0] sm:$0xff] %vm992_vm3, %v988_v5  ;;  %v991_v9 = vadd.f32 %v959_v4, %v925_v6  ;;  %v917_v10 = vadd.f32 %v1486_v26, %v916_v7 }
 0x1ef   : > { %1024 = vst.msk [vmem:[%s1493_s29 + $0xf8] sm:$0xff] %vm992_vm3, %v991_v9  ;;  %v989_v11 = vadd.f32 %v957_v8, %v917_v10 }
 0x1f1   : > { %1022 = vst.msk [vmem:[%s1493_s29 + $0xe8] sm:$0xff] %vm992_vm3, %v989_v11 }
 0x1f2 PF: > { %s16_s21 = sadd.s32 1, %s1318_s21  }
 0x1f3   : > { %p13_p4 = scmp.ge.s32.totalorder %s16_s21, 4  }
 0x1f5   :  { %15 = sbr.rel (!%p13_p4) target bundleno = 1 (0x1), region = 77 }

// kernel: tpu_custom_call.1
= control target key start
LH: loop header
LB: loop body
LE: loop exit
PB: predicated region body
PF: predicated region fallthrough
CT: control target
= control target key end

     0   :  { %s1355_s21 = smov 0   ;;  %s1624_s0 = inlined_call_operand.vmem [shape: bf16[512,72], index: 0, kind: input, shape index: {}]   ;;  %s1625_s1 = inlined_call_operand.vmem [shape: f32[512,8], index: 1, kind: input, shape index: {}]   ;;  %s1626_s2 = inlined_call_operand.vmem [shape: bf16[72,32], index: 2, kind: input, shape index: {}]   ;;  %s1627_s3 = inlined_call_operand.vmem [shape: f32[1,32], index: 3, kind: input, shape index: {}]   ;;  %s1628_s4 = inlined_call_operand.vmem [shape: bf16[32,8], index: 4, kind: input, shape index: {}]   ;;  %s1629_s5 = inlined_call_operand.vmem [shape: f32[1,8], index: 5, kind: input, shape index: {}]   ;;  %s1630_s6 = inlined_call_operand.vmem [shape: f32[512,8], index: 6, kind: output, shape index: {}]  }
   0x1 LB: > { %s1093_s22 = sadd.s32 4294967295, %s1318_s21   ;;  %p1097_p0 = scmp.ge.s32.totalorder %s1318_s21, 1  ;;  %s1318_s21 = sphi %s1355_s21, %s16_s21  }
   0x2   : > { %p224_p1 = scmp.lt.s32.totalorder %s1318_s21, 3 }
   0x4   : > { %p225_p2 = pnand %p1097_p0, %p224_p1 }
   0x5   : > { %s1098_s27 = sshll.u32 (!%p225_p2), %s1093_s22, 5 }
   0x6   : > { %228 = sbr.rel (%p225_p2) target bundleno = 498 (0x1f2), region = 44  ;;  %p260_p3 = scmp.lt.s32.totalorder (!%p225_p2), %s1098_s27, 63 }
   0xb   : > { %v1289_v0 = vld [vmem:[%s1626_s2 + $0x20] ss:$0 sps:$4 sm:$0xff]   ;;  %vm482_vm0 = vcmask 1043456   ;;  %v1290_v1 = vld [vmem:[%s1626_s2 + $0x18] sm:$0xff]   ;;  %v1291_v3 = vld [vmem:[%s1626_s2 + $0x10] sm:$0xff]   ;;  %s1632_s27 = smov (!%p260_p3, %s1098_s27), 63 }
   0xc   : > { %1280 = vmatprep.subr.msk.bf16.mxu0 %vm482_vm0, %v1289_v0  ;;  %v484_v2 = vsel %vm482_vm0, %v1289_v0, 0  ;;  %v1292_v4 = vld [vmem:[%s1626_s2 + $0x8] sm:$0xff]   ;;  %s1099_s8 = sshll.u32 %s1632_s27, 2  ;;  %vm433_vm1 = vcmask 588800   ;;  %v1293_v6 = vld [vmem:[%s1626_s2] sm:$0xff]   ;;  %vm718_vm2 = vcmask 261120  }
   0xd   : > { %1203 = vmatpush3.bf16.msra.mxu0 %v484_v2  ;;  %s1381_s11 = scalar_lea.vmem %s1624_s0, %s1099_s8  ;;  %v1310_v22 = vld [vmem:[%s1628_s4 + $0x8] sm:$0xff]   ;;  %v1311_v23 = vld [vmem:[%s1628_s4] sm:$0xff]   ;;  %s1101_s20 = sshll.u32 %s1632_s27, 3  ;;  %vm992_vm3 = vcmask 64512  }
   0xe   : > { %1204 = vmatprep.subr.bf16.mxu0 %v1290_v1  ;;  %v1294_v5 = vld [vmem:[%s1381_s11] sm:$0xff]   ;;  %v1295_v7 = vld [vmem:[%s1381_s11 + $0x8] sm:$0xff]   ;;  %v1296_v8 = vld [vmem:[%s1381_s11 + $0x10] sm:$0xff]   ;;  %1244 = vmatprep.subr.bf16.mxu1 %v1310_v22  ;;  %s1481_s24 = scalar_lea.vmem %s1625_s1, %s1101_s20  ;;  %s1493_s29 = scalar_lea.vmem %s1630_s6, %s1101_s20 }
   0xf   : > { %1212 = vmatprep.mubr.msk.bf16.mxu0 %vm433_vm1, %v1294_v5  ;;  %v1297_v9 = vld [vmem:[%s1381_s11 + $0x18] sm:$0xff]   ;;  %v1298_v10 = vld [vmem:[%s1381_s11 + $0x20] sm:$0xff]   ;;  %v1299_v11 = vld [vmem:[%s1381_s11 + $0x28] sm:$0xff]   ;;  %1245 = vmatpush3.bf16.msra.mxu1 %v1310_v22 }
  0x10   : > { %v1300_v12 = vld [vmem:[%s1381_s11 + $0x30] sm:$0xff]   ;;  %v1301_v13 = vld [vmem:[%s1381_s11 + $0x38] sm:$0xff]   ;;  %v1302_v14 = vld [vmem:[%s1381_s11 + $0x40] sm:$0xff]   ;;  %1246 = vmatprep.subr.bf16.mxu1 %v1311_v23 }
  0x11   : > { %1205 = vmatpush3.bf16.msra.mxu0 %v1290_v1  ;;  %v1303_v15 = vld [vmem:[%s1381_s11 + $0x48] sm:$0xff]   ;;  %v1304_v16 = vld [vmem:[%s1381_s11 + $0x50] sm:$0xff]   ;;  %v1305_v17 = vld [vmem:[%s1381_s11 + $0x58] sm:$0xff]  }
  0x12   : > { %1206 = vmatprep.subr.bf16.mxu0 %v1291_v3  ;;  %v1306_v18 = vld [vmem:[%s1381_s11 + $0x60] sm:$0xff]   ;;  %v1307_v19 = vld [vmem:[%s1381_s11 + $0x68] sm:$0xff]   ;;  %v1308_v20 = vld [vmem:[%s1381_s11 + $0x70] sm:$0xff]  }
  0x13   : > { %v1309_v21 = vld [vmem:[%s1381_s11 + $0x78] sm:$0xff]   ;;  %1247 = vmatpush3.bf16.msra.mxu1 %v1311_v23  ;;  %v1427_v26 = vld [vmem:[%s1627_s3] ss:$0 sm:$0xff] }
  0x15   : > { %1207 = vmatpush3.bf16.msra.mxu0 %v1291_v3 }
  0x16   : > { %1208 = vmatprep.subr.bf16.mxu0 %v1292_v4 }
  0x19   : > { %1209 = vmatpush3.bf16.msra.mxu0 %v1292_v4 }
  0x1a   : > { %1210 = vmatprep.subr.bf16.mxu0 %v1293_v6 }
  0x1d   : > { %1211 = vmatpush3.bf16.msra.mxu0 %v1293_v6 }
  0x20   : > { %1213 = vmatmul.mubr.msk.bf16.vlgmr.msra.gmra.mxu0 %vm433_vm1, %v1295_v7 }
  0x21   : > { %1216 = vmatprep.mubr.msk.bf16.mxu0 %vm433_vm1, %v1296_v8 }
  0x28   : > { %1217 = vmatmul.mubr.msk.bf16.gmra.mxu0 %vm433_vm1, %v1297_v9 }
  0x29   : > { %1220 = vmatprep.mubr.msk.bf16.mxu0 %vm433_vm1, %v1298_v10 }
  0x30   : > { %1221 = vmatmul.mubr.msk.bf16.gmra.mxu0 %vm433_vm1, %v1299_v11 }
  0x31   : > { %1224 = vmatprep.mubr.msk.bf16.mxu0 %vm433_vm1, %v1300_v12 }
  0x38   : > { %1225 = vmatmul.mubr.msk.bf16.gmra.mxu0 %vm433_vm1, %v1301_v13 }
  0x39   : > { %1228 = vmatprep.mubr.msk.bf16.mxu0 %vm433_vm1, %v1302_v14 }
  0x40   : > { %1229 = vmatmul.mubr.msk.bf16.gmra.mxu0 %vm433_vm1, %v1303_v15 }
  0x41   : > { %1232 = vmatprep.mubr.msk.bf16.mxu0 %vm433_vm1, %v1304_v16 }
  0x48   : > { %1233 = vmatmul.mubr.msk.bf16.gmra.mxu0 %vm433_vm1, %v1305_v17 }
  0x49   : > { %1236 = vmatprep.mubr.msk.bf16.mxu0 %vm433_vm1, %v1306_v18 }
  0x50   : > { %1237 = vmatmul.mubr.msk.bf16.gmra.mxu0 %vm433_vm1, %v1307_v19 }
  0x51   : > { %1240 = vmatprep.mubr.msk.bf16.mxu0 %vm433_vm1, %v1308_v20 }
  0x58   : > { %1241 = vmatmul.mubr.msk.bf16.gmra.mxu0 %vm433_vm1, %v1309_v21 }
  0xe0   : > { %v1214_v24 = vpop.f32.mrf.mxu0 }
  0xe1   : > { %v529_v30 = vadd.f32 %v1214_v24, %v1427_v26 }
  0xe2   : > { %v520_v25 = vpop.f32.mrf.mxu0 }
  0xe3   : > { %v521_v28 = vadd.f32 %v1427_v26, %v520_v25  ;;  %v649_v37 = vmax.f32 %v529_v30, 0.0 }
  0xe4   : > { %v1215_v27 = vpop.f32.mrf.mxu0 }
  0xe5   : > { %v532_v29 = vadd.f32 %v1215_v27, %v1427_v26  ;;  %v647_v35 = vmax.f32 %v521_v28, 0.0 }
  0xe6   : > { %v523_v31 = vpop.f32.mrf.mxu0 }
  0xe7   : > { %v524_v32 = vadd.f32 %v1427_v26, %v523_v31  ;;  %v650_v33 = vmax.f32 %v532_v29, 0.0 }
  0xe8   : > { %v1218_v34 = vpop.f32.mrf.mxu0 }
  0xe9   : > { %v648_v36 = vmax.f32 %v524_v32, 0.0  ;;  %v680_v40 = vpack.c.bf16 %v650_v33, %v649_v37  ;;  %v545_v44 = vadd.f32 %v1218_v34, %v1427_v26 }
  0xea   : > { %v536_v38 = vpop.f32.mrf.mxu0 }
  0xeb   : > { %v679_v39 = vpack.c.bf16 %v648_v36, %v647_v35  ;;  %v537_v42 = vadd.f32 %v1427_v26, %v536_v38  ;;  %v653_v51 = vmax.f32 %v545_v44, 0.0 }
  0xec   : > { %v1219_v41 = vpop.f32.mrf.mxu0 }
  0xed   : > { %v548_v43 = vadd.f32 %v1219_v41, %v1427_v26  ;;  %1248 = vmatprep.mubr.msk.bf16.mxu1 %vm718_vm2, %v679_v39  ;;  %v651_v49 = vmax.f32 %v537_v42, 0.0 }
  0xee   : > { %v539_v45 = vpop.f32.mrf.mxu0  ;;  %1249 = vmatmul.mubr.msk.bf16.vlgmr.msra.gmra.mxu1 %vm718_vm2, %v680_v40 }
  0xef   : > { %v540_v46 = vadd.f32 %v1427_v26, %v539_v45  ;;  %v654_v47 = vmax.f32 %v548_v43, 0.0 }
  0xf0   : > { %v1222_v48 = vpop.f32.mrf.mxu0 }
  0xf1   : > { %v652_v50 = vmax.f32 %v540_v46, 0.0  ;;  %v682_v54 = vpack.c.bf16 %v654_v47, %v653_v51  ;;  %v561_v58 = vadd.f32 %v1222_v48, %v1427_v26 }
  0xf2   : > { %v552_v52 = vpop.f32.mrf.mxu0 }
  0xf3   : > { %v681_v53 = vpack.c.bf16 %v652_v50, %v651_v49  ;;  %v553_v56 = vadd.f32 %v1427_v26, %v552_v52  ;;  %v657_v1 = vmax.f32 %v561_v58, 0.0 }
  0xf4   : > { %v1223_v55 = vpop.f32.mrf.mxu0 }
  0xf5   : > { %v564_v57 = vadd.f32 %v1223_v55, %v1427_v26  ;;  %1252 = vmatprep.mubr.msk.bf16.mxu1 %vm718_vm2, %v681_v53  ;;  %v655_v63 = vmax.f32 %v553_v56, 0.0 }
  0xf6   : > { %v555_v59 = vpop.f32.mrf.mxu0  ;;  %1253 = vmatmul.mubr.msk.bf16.gmra.mxu1 %vm718_vm2, %v682_v54 }
  0xf7   : > { %v556_v60 = vadd.f32 %v1427_v26, %v555_v59  ;;  %v658_v61 = vmax.f32 %v564_v57, 0.0 }
  0xf8   : > { %v1226_v62 = vpop.f32.mrf.mxu0 }
  0xf9   : > { %v656_v0 = vmax.f32 %v556_v60, 0.0  ;;  %v684_v4 = vpack.c.bf16 %v658_v61, %v657_v1  ;;  %v577_v8 = vadd.f32 %v1226_v62, %v1427_v26 }
  0xfa   : > { %v568_v2 = vpop.f32.mrf.mxu0 }
  0xfb   : > { %v683_v3 = vpack.c.bf16 %v656_v0, %v655_v63  ;;  %v569_v6 = vadd.f32 %v1427_v26, %v568_v2  ;;  %v661_v15 = vmax.f32 %v577_v8, 0.0 }
  0xfc   : > { %v1227_v5 = vpop.f32.mrf.mxu0 }
  0xfd   : > { %v580_v7 = vadd.f32 %v1227_v5, %v1427_v26  ;;  %1256 = vmatprep.mubr.msk.bf16.mxu1 %vm718_vm2, %v683_v3  ;;  %v659_v13 = vmax.f32 %v569_v6, 0.0 }
  0xfe   : > { %v571_v9 = vpop.f32.mrf.mxu0  ;;  %1257 = vmatmul.mubr.msk.bf16.gmra.mxu1 %vm718_vm2, %v684_v4 }
  0xff   : > { %v572_v10 = vadd.f32 %v1427_v26, %v571_v9  ;;  %v662_v11 = vmax.f32 %v580_v7, 0.0 }
 0x100   : > { %v1230_v12 = vpop.f32.mrf.mxu0 }
 0x101   : > { %v660_v14 = vmax.f32 %v572_v10, 0.0  ;;  %v686_v18 = vpack.c.bf16 %v662_v11, %v661_v15  ;;  %v593_v22 = vadd.f32 %v1230_v12, %v1427_v26  ;;  %v930_v11 = vld [vmem:[%s1481_s24 + $0x10] sm:$0xff] }
 0x102   : > { %v584_v16 = vpop.f32.mrf.mxu0 }
 0x103   : > { %v685_v17 = vpack.c.bf16 %v660_v14, %v659_v13  ;;  %v585_v20 = vadd.f32 %v1427_v26, %v584_v16  ;;  %v665_v30 = vmax.f32 %v593_v22, 0.0  ;;  %v928_v14 = vld [vmem:[%s1481_s24] sm:$0xff]  ;;  %v929_v22 = vld [vmem:[%s1481_s24 + $0x8] sm:$0xff] }
 0x104   : > { %v1231_v19 = vpop.f32.mrf.mxu0 }
 0x105   : > { %v596_v21 = vadd.f32 %v1231_v19, %v1427_v26  ;;  %1260 = vmatprep.mubr.msk.bf16.mxu1 %vm718_vm2, %v685_v17  ;;  %v663_v28 = vmax.f32 %v585_v20, 0.0 }
 0x106   : > { %v587_v23 = vpop.f32.mrf.mxu0  ;;  %1261 = vmatmul.mubr.msk.bf16.gmra.mxu1 %vm718_vm2, %v686_v18  ;;  %v931_v18 = vld [vmem:[%s1481_s24 + $0x18] sm:$0xff] }
 0x107   : > { %v588_v24 = vadd.f32 %v1427_v26, %v587_v23  ;;  %v666_v25 = vmax.f32 %v596_v21, 0.0 }
 0x108   : > { %v1234_v27 = vpop.f32.mrf.mxu0 }
 0x109   : > { %v664_v29 = vmax.f32 %v588_v24, 0.0  ;;  %v688_v33 = vpack.c.bf16 %v666_v25, %v665_v30  ;;  %v609_v37 = vadd.f32 %v1234_v27, %v1427_v26  ;;  %v934_v27 = vld [vmem:[%s1481_s24 + $0x30] sm:$0xff] }
 0x10a   : > { %v600_v31 = vpop.f32.mrf.mxu0 }
 0x10b   : > { %v687_v32 = vpack.c.bf16 %v664_v29, %v663_v28  ;;  %v601_v35 = vadd.f32 %v1427_v26, %v600_v31  ;;  %v669_v44 = vmax.f32 %v609_v37, 0.0  ;;  %v932_v31 = vld [vmem:[%s1481_s24 + $0x20] sm:$0xff] }
 0x10c   : > { %v1235_v34 = vpop.f32.mrf.mxu0 }
 0x10d   : > { %v612_v36 = vadd.f32 %v1235_v34, %v1427_v26  ;;  %1264 = vmatprep.mubr.msk.bf16.mxu1 %vm718_vm2, %v687_v32  ;;  %v667_v42 = vmax.f32 %v601_v35, 0.0  ;;  %v935_v35 = vld [vmem:[%s1481_s24 + $0x38] sm:$0xff] }
 0x10e   : > { %v603_v38 = vpop.f32.mrf.mxu0  ;;  %1265 = vmatmul.mubr.msk.bf16.gmra.mxu1 %vm718_vm2, %v688_v33 }
 0x10f   : > { %v604_v39 = vadd.f32 %v1427_v26, %v603_v38  ;;  %v670_v40 = vmax.f32 %v612_v36, 0.0 }
 0x110   : > { %v1238_v41 = vpop.f32.mrf.mxu0 }
 0x111   : > { %v668_v43 = vmax.f32 %v604_v39, 0.0  ;;  %v690_v47 = vpack.c.bf16 %v670_v40, %v669_v44  ;;  %v625_v51 = vadd.f32 %v1238_v41, %v1427_v26  ;;  %v933_v39 = vld [vmem:[%s1481_s24 + $0x28] sm:$0xff] }
 0x112   : > { %v616_v45 = vpop.f32.mrf.mxu0 }
 0x113   : > { %v689_v46 = vpack.c.bf16 %v668_v43, %v667_v42  ;;  %v617_v49 = vadd.f32 %v1427_v26, %v616_v45  ;;  %v673_v58 = vmax.f32 %v625_v51, 0.0  ;;  %v938_v43 = vld [vmem:[%s1481_s24 + $0x50] sm:$0xff]  ;;  %v939_v51 = vld [vmem:[%s1481_s24 + $0x58] sm:$0xff] }
 0x114   : > { %v1239_v48 = vpop.f32.mrf.mxu0 }
 0x115   : > { %v628_v50 = vadd.f32 %v1239_v48, %v1427_v26  ;;  %1268 = vmatprep.mubr.msk.bf16.mxu1 %vm718_vm2, %v689_v46  ;;  %v671_v56 = vmax.f32 %v617_v49, 0.0 }
 0x116   : > { %v619_v52 = vpop.f32.mrf.mxu0  ;;  %1269 = vmatmul.mubr.msk.bf16.gmra.mxu1 %vm718_vm2, %v690_v47  ;;  %v936_v47 = vld [vmem:[%s1481_s24 + $0x40] sm:$0xff] }
 0x117   : > { %v620_v53 = vadd.f32 %v1427_v26, %v619_v52  ;;  %v674_v54 = vmax.f32 %v628_v50, 0.0 }
 0x118   : > { %v1242_v55 = vpop.f32.mrf.mxu0 }
 0x119   : > { %v672_v57 = vmax.f32 %v620_v53, 0.0  ;;  %v692_v61 = vpack.c.bf16 %v674_v54, %v673_v58  ;;  %v641_v1 = vadd.f32 %v1242_v55, %v1427_v26  ;;  %v937_v55 = vld [vmem:[%s1481_s24 + $0x48] sm:$0xff] }
 0x11a   : > { %v632_v59 = vpop.f32.mrf.mxu0 }
 0x11b   : > { %v691_v60 = vpack.c.bf16 %v672_v57, %v671_v56  ;;  %v633_v63 = vadd.f32 %v1427_v26, %v632_v59  ;;  %v677_v7 = vmax.f32 %v641_v1, 0.0  ;;  %v942_v59 = vld [vmem:[%s1481_s24 + $0x70] sm:$0xff] }
 0x11c   : > { %v1243_v62 = vpop.f32.mrf.mxu0 }
 0x11d   : > { %v644_v0 = vadd.f32 %v1243_v62, %v1427_v26  ;;  %1272 = vmatprep.mubr.msk.bf16.mxu1 %vm718_vm2, %v691_v60  ;;  %v675_v5 = vmax.f32 %v633_v63, 0.0  ;;  %v940_v63 = vld [vmem:[%s1481_s24 + $0x60] sm:$0xff] }
 0x11e   : > { %v635_v2 = vpop.f32.mrf.mxu0  ;;  %1273 = vmatmul.mubr.msk.bf16.gmra.mxu1 %vm718_vm2, %v692_v61 }
 0x11f   : > { %v636_v3 = vadd.f32 %v1427_v26, %v635_v2  ;;  %v678_v4 = vmax.f32 %v644_v0, 0.0  ;;  %v1486_v26 = vld [vmem:[%s1629_s5] ss:$0 sm:$0xff] }
 0x121   : > { %v676_v6 = vmax.f32 %v636_v3, 0.0  ;;  %v694_v9 = vpack.c.bf16 %v678_v4, %v677_v7  ;;  %v943_v3 = vld [vmem:[%s1481_s24 + $0x78] sm:$0xff]  ;;  %v941_v7 = vld [vmem:[%s1481_s24 + $0x68] sm:$0xff] }
 0x123   : > { %v693_v8 = vpack.c.bf16 %v676_v6, %v675_v5 }
 0x125   : > { %1276 = vmatprep.mubr.msk.bf16.mxu1 %vm718_vm2, %v693_v8 }
 0x126   : > { %1277 = vmatmul.mubr.msk.bf16.gmra.mxu1 %vm718_vm2, %v694_v9 }
 0x1ae   : > { %v1250_v10 = vpop.f32.mrf.mxu1 }
 0x1af   : > { %v810_v12 = vadd.f32 %v1250_v10, %v1486_v26 }
 0x1b0   : > { %v801_v13 = vpop.f32.mrf.mxu1 }
 0x1b1   : > { %v962_v15 = vadd.f32 %v930_v11, %v810_v12  ;;  %v802_v16 = vadd.f32 %v1486_v26, %v801_v13  ;;  %v946_v11 = vld [vmem:[%s1481_s24 + $0x90] sm:$0xff] }
 0x1b2   : > { %v1251_v17 = vpop.f32.mrf.mxu1 }
 0x1b3   : > { %995 = vst.msk [vmem:[%s1493_s29 + $0x10] sm:$0xff] %vm992_vm3, %v962_v15  ;;  %v960_v19 = vadd.f32 %v928_v14, %v802_v16  ;;  %v813_v20 = vadd.f32 %v1251_v17, %v1486_v26  ;;  %v944_v15 = vld [vmem:[%s1481_s24 + $0x80] sm:$0xff] }
 0x1b4   : > { %v804_v21 = vpop.f32.mrf.mxu1 }
 0x1b5   : > { %993 = vst.msk [vmem:[%s1493_s29] sm:$0xff] %vm992_vm3, %v960_v19  ;;  %v963_v23 = vadd.f32 %v931_v18, %v813_v20  ;;  %v805_v24 = vadd.f32 %v1486_v26, %v804_v21  ;;  %v947_v19 = vld [vmem:[%s1481_s24 + $0x98] sm:$0xff] }
 0x1b6   : > { %v1254_v25 = vpop.f32.mrf.mxu1 }
 0x1b7   : > { %996 = vst.msk [vmem:[%s1493_s29 + $0x18] sm:$0xff] %vm992_vm3, %v963_v23  ;;  %v961_v28 = vadd.f32 %v929_v22, %v805_v24  ;;  %v826_v29 = vadd.f32 %v1254_v25, %v1486_v26  ;;  %v945_v23 = vld [vmem:[%s1481_s24 + $0x88] sm:$0xff] }
 0x1b8   : > { %v817_v30 = vpop.f32.mrf.mxu1 }
 0x1b9   : > { %994 = vst.msk [vmem:[%s1493_s29 + $0x8] sm:$0xff] %vm992_vm3, %v961_v28  ;;  %v966_v32 = vadd.f32 %v934_v27, %v826_v29  ;;  %v818_v33 = vadd.f32 %v1486_v26, %v817_v30  ;;  %v950_v28 = vld [vmem:[%s1481_s24 + $0xb0] sm:$0xff] }
 0x1ba   : > { %v1255_v34 = vpop.f32.mrf.mxu1 }
 0x1bb   : > { %999 = vst.msk [vmem:[%s1493_s29 + $0x30] sm:$0xff] %vm992_vm3, %v966_v32  ;;  %v964_v36 = vadd.f32 %v932_v31, %v818_v33  ;;  %v829_v37 = vadd.f32 %v1255_v34, %v1486_v26  ;;  %v948_v32 = vld [vmem:[%s1481_s24 + $0xa0] sm:$0xff] }
 0x1bc   : > { %v820_v38 = vpop.f32.mrf.mxu1 }
 0x1bd   : > { %997 = vst.msk [vmem:[%s1493_s29 + $0x20] sm:$0xff] %vm992_vm3, %v964_v36  ;;  %v967_v40 = vadd.f32 %v935_v35, %v829_v37  ;;  %v821_v41 = vadd.f32 %v1486_v26, %v820_v38  ;;  %v951_v36 = vld [vmem:[%s1481_s24 + $0xb8] sm:$0xff] }
 0x1be   : > { %v1258_v42 = vpop.f32.mrf.mxu1 }
 0x1bf   : > { %1000 = vst.msk [vmem:[%s1493_s29 + $0x38] sm:$0xff] %vm992_vm3, %v967_v40  ;;  %v965_v44 = vadd.f32 %v933_v39, %v821_v41  ;;  %v842_v45 = vadd.f32 %v1258_v42, %v1486_v26  ;;  %v949_v40 = vld [vmem:[%s1481_s24 + $0xa8] sm:$0xff] }
 0x1c0   : > { %v833_v46 = vpop.f32.mrf.mxu1 }
 0x1c1   : > { %998 = vst.msk [vmem:[%s1493_s29 + $0x28] sm:$0xff] %vm992_vm3, %v965_v44  ;;  %v970_v48 = vadd.f32 %v938_v43, %v842_v45  ;;  %v834_v49 = vadd.f32 %v1486_v26, %v833_v46  ;;  %v954_v44 = vld [vmem:[%s1481_s24 + $0xd0] sm:$0xff] }
 0x1c2   : > { %v1259_v50 = vpop.f32.mrf.mxu1 }
 0x1c3   : > { %1003 = vst.msk [vmem:[%s1493_s29 + $0x50] sm:$0xff] %vm992_vm3, %v970_v48  ;;  %v968_v52 = vadd.f32 %v936_v47, %v834_v49  ;;  %v845_v53 = vadd.f32 %v1259_v50, %v1486_v26  ;;  %v952_v48 = vld [vmem:[%s1481_s24 + $0xc0] sm:$0xff] }
 0x1c4   : > { %v836_v54 = vpop.f32.mrf.mxu1 }
 0x1c5   : > { %1001 = vst.msk [vmem:[%s1493_s29 + $0x40] sm:$0xff] %vm992_vm3, %v968_v52  ;;  %v971_v56 = vadd.f32 %v939_v51, %v845_v53  ;;  %v837_v57 = vadd.f32 %v1486_v26, %v836_v54  ;;  %v955_v52 = vld [vmem:[%s1481_s24 + $0xd8] sm:$0xff] }
 0x1c6   : > { %v1262_v58 = vpop.f32.mrf.mxu1 }
 0x1c7   : > { %1004 = vst.msk [vmem:[%s1493_s29 + $0x58] sm:$0xff] %vm992_vm3, %v971_v56  ;;  %v969_v60 = vadd.f32 %v937_v55, %v837_v57  ;;  %v858_v61 = vadd.f32 %v1262_v58, %v1486_v26  ;;  %v953_v56 = vld [vmem:[%s1481_s24 + $0xc8] sm:$0xff] }
 0x1c8   : > { %v849_v62 = vpop.f32.mrf.mxu1 }
 0x1c9   : > { %1002 = vst.msk [vmem:[%s1493_s29 + $0x48] sm:$0xff] %vm992_vm3, %v969_v60  ;;  %v974_v0 = vadd.f32 %v942_v59, %v858_v61  ;;  %v850_v1 = vadd.f32 %v1486_v26, %v849_v62  ;;  %v958_v60 = vld [vmem:[%s1481_s24 + $0xf0] sm:$0xff] }
 0x1ca   : > { %v1263_v2 = vpop.f32.mrf.mxu1 }
 0x1cb   : > { %1007 = vst.msk [vmem:[%s1493_s29 + $0x70] sm:$0xff] %vm992_vm3, %v974_v0  ;;  %v972_v4 = vadd.f32 %v940_v63, %v850_v1  ;;  %v861_v5 = vadd.f32 %v1263_v2, %v1486_v26  ;;  %v956_v0 = vld [vmem:[%s1481_s24 + $0xe0] sm:$0xff] }
 0x1cc   : > { %v852_v6 = vpop.f32.mrf.mxu1 }
 0x1cd   : > { %1005 = vst.msk [vmem:[%s1493_s29 + $0x60] sm:$0xff] %vm992_vm3, %v972_v4  ;;  %v975_v8 = vadd.f32 %v943_v3, %v861_v5  ;;  %v853_v9 = vadd.f32 %v1486_v26, %v852_v6  ;;  %v959_v4 = vld [vmem:[%s1481_s24 + $0xf8] sm:$0xff] }
 0x1ce   : > { %v1266_v10 = vpop.f32.mrf.mxu1 }
 0x1cf   : > { %1008 = vst.msk [vmem:[%s1493_s29 + $0x78] sm:$0xff] %vm992_vm3, %v975_v8  ;;  %v973_v12 = vadd.f32 %v941_v7, %v853_v9  ;;  %v874_v13 = vadd.f32 %v1266_v10, %v1486_v26  ;;  %v957_v8 = vld [vmem:[%s1481_s24 + $0xe8] sm:$0xff] }
 0x1d0   : > { %v865_v14 = vpop.f32.mrf.mxu1 }
 0x1d1   : > { %1006 = vst.msk [vmem:[%s1493_s29 + $0x68] sm:$0xff] %vm992_vm3, %v973_v12  ;;  %v978_v16 = vadd.f32 %v946_v11, %v874_v13  ;;  %v866_v17 = vadd.f32 %v1486_v26, %v865_v14 }
 0x1d2   : > { %v1267_v18 = vpop.f32.mrf.mxu1 }
 0x1d3   : > { %1011 = vst.msk [vmem:[%s1493_s29 + $0x90] sm:$0xff] %vm992_vm3, %v978_v16  ;;  %v976_v20 = vadd.f32 %v944_v15, %v866_v17  ;;  %v877_v21 = vadd.f32 %v1267_v18, %v1486_v26 }
 0x1d4   : > { %v868_v22 = vpop.f32.mrf.mxu1 }
 0x1d5   : > { %1009 = vst.msk [vmem:[%s1493_s29 + $0x80] sm:$0xff] %vm992_vm3, %v976_v20  ;;  %v979_v24 = vadd.f32 %v947_v19, %v877_v21  ;;  %v869_v25 = vadd.f32 %v1486_v26, %v868_v22 }
 0x1d6   : > { %v1270_v27 = vpop.f32.mrf.mxu1 }
 0x1d7   : > { %1012 = vst.msk [vmem:[%s1493_s29 + $0x98] sm:$0xff] %vm992_vm3, %v979_v24  ;;  %v977_v29 = vadd.f32 %v945_v23, %v869_v25  ;;  %v890_v30 = vadd.f32 %v1270_v27, %v1486_v26 }
 0x1d8   : > { %v881_v31 = vpop.f32.mrf.mxu1 }
 0x1d9   : > { %1010 = vst.msk [vmem:[%s1493_s29 + $0x88] sm:$0xff] %vm992_vm3, %v977_v29  ;;  %v982_v33 = vadd.f32 %v950_v28, %v890_v30  ;;  %v882_v34 = vadd.f32 %v1486_v26, %v881_v31 }
 0x1da   : > { %v1271_v35 = vpop.f32.mrf.mxu1 }
 0x1db   : > { %1015 = vst.msk [vmem:[%s1493_s29 + $0xb0] sm:$0xff] %vm992_vm3, %v982_v33  ;;  %v980_v37 = vadd.f32 %v948_v32, %v882_v34  ;;  %v893_v38 = vadd.f32 %v1271_v35, %v1486_v26 }
 0x1dc   : > { %v884_v39 = vpop.f32.mrf.mxu1 }
 0x1dd   : > { %1013 = vst.msk [vmem:[%s1493_s29 + $0xa0] sm:$0xff] %vm992_vm3, %v980_v37  ;;  %v983_v41 = vadd.f32 %v951_v36, %v893_v38  ;;  %v885_v42 = vadd.f32 %v1486_v26, %v884_v39 }
 0x1de   : > { %v1274_v43 = vpop.f32.mrf.mxu1 }
 0x1df   : > { %1016 = vst.msk [vmem:[%s1493_s29 + $0xb8] sm:$0xff] %vm992_vm3, %v983_v41  ;;  %v981_v45 = vadd.f32 %v949_v40, %v885_v42  ;;  %v906_v46 = vadd.f32 %v1274_v43, %v1486_v26 }
 0x1e0   : > { %v897_v47 = vpop.f32.mrf.mxu1 }
 0x1e1   : > { %1014 = vst.msk [vmem:[%s1493_s29 + $0xa8] sm:$0xff] %vm992_vm3, %v981_v45  ;;  %v986_v49 = vadd.f32 %v954_v44, %v906_v46  ;;  %v898_v50 = vadd.f32 %v1486_v26, %v897_v47 }
 0x1e2   : > { %v1275_v51 = vpop.f32.mrf.mxu1 }
 0x1e3   : > { %1019 = vst.msk [vmem:[%s1493_s29 + $0xd0] sm:$0xff] %vm992_vm3, %v986_v49  ;;  %v984_v53 = vadd.f32 %v952_v48, %v898_v50  ;;  %v909_v54 = vadd.f32 %v1275_v51, %v1486_v26 }
 0x1e4   : > { %v900_v55 = vpop.f32.mrf.mxu1 }
 0x1e5   : > { %1017 = vst.msk [vmem:[%s1493_s29 + $0xc0] sm:$0xff] %vm992_vm3, %v984_v53  ;;  %v987_v57 = vadd.f32 %v955_v52, %v909_v54  ;;  %v901_v58 = vadd.f32 %v1486_v26, %v900_v55 }
 0x1e6   : > { %v1278_v59 = vpop.f32.mrf.mxu1 }
 0x1e7   : > { %1020 = vst.msk [vmem:[%s1493_s29 + $0xd8] sm:$0xff] %vm992_vm3, %v987_v57  ;;  %v985_v61 = vadd.f32 %v953_v56, %v901_v58  ;;  %v922_v62 = vadd.f32 %v1278_v59, %v1486_v26 }
 0x1e8   : > { %v913_v63 = vpop.f32.mrf.mxu1 }
 0x1e9   : > { %1018 = vst.msk [vmem:[%s1493_s29 + $0xc8] sm:$0xff] %vm992_vm3, %v985_v61  ;;  %v990_v1 = vadd.f32 %v958_v60, %v922_v62  ;;  %v914_v2 = vadd.f32 %v1486_v26, %v913_v63 }
 0x1ea   : > { %v1279_v3 = vpop.f32.mrf.mxu1 }
 0x1eb   : > { %1023 = vst.msk [vmem:[%s1493_s29 + $0xf0] sm:$0xff] %vm992_vm3, %v990_v1  ;;  %v988_v5 = vadd.f32 %v956_v0, %v914_v2  ;;  %v925_v6 = vadd.f32 %v1279_v3, %v1486_v26 }
 0x1ec   : > { %v916_v7 = vpop.f32.mrf.mxu1 }
 0x1ed   : > { %1021 = vst.msk [vmem:[%s1493_s29 + $0xe0] sm:$0xff] %vm992_vm3, %v988_v5  ;;  %v991_v9 = vadd.f32 %v959_v4, %v925_v6  ;;  %v917_v10 = vadd.f32 %v1486_v26, %v916_v7 }
 0x1ef   : > { %1024 = vst.msk [vmem:[%s1493_s29 + $0xf8] sm:$0xff] %vm992_vm3, %v991_v9  ;;  %v989_v11 = vadd.f32 %v957_v8, %v917_v10 }
 0x1f1   : > { %1022 = vst.msk [vmem:[%s1493_s29 + $0xe8] sm:$0xff] %vm992_vm3, %v989_v11 }
 0x1f2 PF: > { %s16_s21 = sadd.s32 1, %s1318_s21  }
 0x1f3   : > { %p13_p4 = scmp.ge.s32.totalorder %s16_s21, 4  }
 0x1f5   :  { %15 = sbr.rel (!%p13_p4) target bundleno = 1 (0x1), region = 77 }

</bundles_post_ra>
